<compile_context>
chip_gen: v5e
topology: v5e:2x2
jax: 0.10.0
libtpu: 0.0.40
codegen_flags: <defaults>
</compile_context>

<pallas_src>
import jax
import jax.numpy as jnp
from jax.experimental import pallas as pl
from jax.experimental.pallas import tpu as pltpu

HIDDEN = 128
NEG_SLOPE = 0.01
SUBLANE = 8


def _round_up(x, m):
    return ((x + m - 1) // m) * m


def _leaky_relu(x, slope=NEG_SLOPE):
    return jnp.where(x > 0, x, slope * x)


def qnetwork_kernel(x_ref, w1_ref, b1_ref, w2_ref, b2_ref, w3_ref, b3_ref, o_ref):
    # All matmuls run on the MXU with f32 accumulation; bias-add and LeakyReLU
    # epilogues stay in f32 (no low-precision elementwise work).
    x = x_ref[...].astype(w1_ref.dtype)
    h1 = jnp.dot(x, w1_ref[...], preferred_element_type=jnp.float32)
    h1 = _leaky_relu(h1 + b1_ref[...])

    h2 = jnp.dot(h1.astype(w2_ref.dtype), w2_ref[...],
                 preferred_element_type=jnp.float32)
    h2 = _leaky_relu(h2 + b2_ref[...])

    out = jnp.dot(h2.astype(w3_ref.dtype), w3_ref[...],
                  preferred_element_type=jnp.float32)
    o_ref[...] = (out + b3_ref[...]).astype(o_ref.dtype)


def prepare_params(params, compute_dtype=jnp.bfloat16):
    """One-time cast/reshape of the weights for the kernel.

    Hoist this out of the training loop: weights never change shape between
    steps, so per-forward casting/padding would just add HBM round trips.
    Biases stay f32 (they feed the f32 epilogue).
    """
    def bias2d(b):
        return b.reshape(1, -1).astype(jnp.float32)

    return {
        "w1": params["w1"].astype(compute_dtype),
        "w2": params["w2"].astype(compute_dtype),
        "w3": params["w3"].astype(compute_dtype),
        "b1": bias2d(params["b1"]),
        "b2": bias2d(params["b2"]),
        "b3": bias2d(params["b3"]),
    }


def qnetwork_forward(x, prepared, *, block_batch=1024):
    """QNetwork forward. x: (batch, d_in) -> (batch, d_out) f32.

    `prepared` comes from prepare_params(). For tiny action-selection batches
    (batch <= ~64) prefer qnetwork_reference(): the Pallas call there is pure
    launch overhead.
    """
    w1, b1 = prepared["w1"], prepared["b1"]
    w2, b2 = prepared["w2"], prepared["b2"]
    w3, b3 = prepared["w3"], prepared["b3"]

    batch, d_in = x.shape
    d_out = w3.shape[1]

    # Batch tile: multiple of 8 sublanes, as large as requested (default 1024
    # keeps VMEM use trivially below every generation's scoped default), but
    # split into >=2 even tiles when possible so the "parallel" batch axis can
    # shard across v7x's two TensorCores.
    batch_su = _round_up(batch, SUBLANE)
    tb = min(_round_up(block_batch, SUBLANE), batch_su)
    if batch_su // tb < 2 and batch_su >= 2 * SUBLANE:
        tb = _round_up(pl.cdiv(batch_su, 2), SUBLANE)
    batch_p = _round_up(batch, tb)
    grid = (batch_p // tb,)

    # Only pad batch rows when actually needed (padded rows are sliced off).
    if batch_p != batch:
        x_in = jnp.zeros((batch_p, d_in), x.dtype).at[:batch, :].set(x)
    else:
        x_in = x

    const = lambda i: (0, 0)  # weights/biases stay VMEM-resident across steps
    in_specs = [
        pl.BlockSpec((tb, d_in), lambda i: (i, 0)),  # x: streamed over batch
        pl.BlockSpec((d_in, HIDDEN), const),         # w1
        pl.BlockSpec((1, HIDDEN), const),            # b1
        pl.BlockSpec((HIDDEN, HIDDEN), const),       # w2
        pl.BlockSpec((1, HIDDEN), const),            # b2
        pl.BlockSpec((HIDDEN, d_out), const),        # w3
        pl.BlockSpec((1, d_out), const),             # b3
    ]
    out_specs = pl.BlockSpec((tb, d_out), lambda i: (i, 0))

    w_item = jnp.dtype(w1.dtype).itemsize
    flops = 2 * batch_p * (d_in * HIDDEN + HIDDEN * HIDDEN + HIDDEN * d_out)
    bytes_accessed = (
        batch_p * d_in * x.dtype.itemsize
        + (d_in * HIDDEN + HIDDEN * HIDDEN + HIDDEN * d_out) * w_item
        + (2 * HIDDEN + d_out) * 4
        + batch_p * d_out * 4
    )

    out_p = pl.pallas_call(
        qnetwork_kernel,
        out_shape=jax.ShapeDtypeStruct((batch_p, d_out), jnp.float32),
        grid=grid,
        in_specs=in_specs,
        out_specs=out_specs,
        compiler_params=pltpu.CompilerParams(
            dimension_semantics=("parallel",)),
        cost_estimate=pl.CostEstimate(
            flops=flops, bytes_accessed=bytes_accessed, transcendentals=0),
    )(x_in, w1, b1, w2, b2, w3, b3)

    return out_p[:batch, :] if batch_p != batch else out_p


def qnetwork_reference(x, params):
    """Plain-XLA forward (also the recommended path for tiny batches)."""
    h = _leaky_relu(x @ params["w1"] + params["b1"])
    h = _leaky_relu(h @ params["w2"] + params["b2"])
    return h @ params["w3"] + params["b3"]


def init_params(key, input_dim, output_dim, hidden=HIDDEN):
    """Mimics torch.nn.Linear default init U(-1/sqrt(fan_in), +1/sqrt(fan_in)).

    Weights are stored transposed relative to torch ((in, out)) so the kernel
    computes x @ W + b directly on the MXU.  Always drawn in f32; any bf16
    cast happens once in prepare_params().
    """
    ks = jax.random.split(key, 6)

    def linear_init(kw, kb, fan_in, fan_out):
        bound = 1.0 / jnp.sqrt(jnp.float32(fan_in))
        w = jax.random.uniform(kw, (fan_in, fan_out), jnp.float32, -bound, bound)
        b = jax.random.uniform(kb, (1, fan_out), jnp.float32, -bound, bound)
        return w, b

    w1, b1 = linear_init(ks[0], ks[1], input_dim, hidden)
    w2, b2 = linear_init(ks[2], ks[3], hidden, hidden)
    w3, b3 = linear_init(ks[4], ks[5], hidden, output_dim)
    return {"w1": w1, "b1": b1, "w2": w2, "b2": b2, "w3": w3, "b3": b3}


if __name__ == "__main__":
    key = jax.random.PRNGKey(0)
    k_param, k_x, k_x2 = jax.random.split(key, 3)

    # CartPole-like DQN shapes.
    batch, input_dim, output_dim = 8, 4, 2
    params = init_params(k_param, input_dim, output_dim)
    x = jax.random.normal(k_x, (batch, input_dim), jnp.float32)

    expected = qnetwork_reference(x, params)

    # Exact-semantics check: f32 compute path, single-tile grid.
    prep_f32 = prepare_params(params, jnp.float32)
    out_f32 = jax.block_until_ready(qnetwork_forward(x, prep_f32))
    assert out_f32.shape == (batch, output_dim)
    assert jnp.allclose(out_f32, expected, atol=1e-5, rtol=1e-5)

    # Default bf16 fast path on a replay-buffer-style minibatch whose size is
    # not a multiple of the tile (exercises multi-tile grid + batch padding).
    prep_bf16 = prepare_params(params, jnp.bfloat16)
    xb = jax.random.normal(k_x2, (200, input_dim), jnp.float32)
    expected_b = qnetwork_reference(xb, params)
    out_b = jax.block_until_ready(
        qnetwork_forward(xb, prep_bf16, block_batch=64))
    assert out_b.shape == (200, output_dim)
    assert jnp.allclose(out_b, expected_b, atol=5e-2, rtol=5e-2)

    print("KERNEL_OK")
</pallas_src>

<mosaic_0001>
module attributes {stable_mosaic.version = 11 : i64} {
  func.func @qnetwork_kernel(%arg0: i32, %arg1: memref<8x4xf32, #tpu.memory_space<vmem>>, %arg2: memref<4x128xf32, #tpu.memory_space<vmem>>, %arg3: memref<1x128xf32, #tpu.memory_space<vmem>>, %arg4: memref<128x128xf32, #tpu.memory_space<vmem>>, %arg5: memref<1x128xf32, #tpu.memory_space<vmem>>, %arg6: memref<128x2xf32, #tpu.memory_space<vmem>>, %arg7: memref<1x2xf32, #tpu.memory_space<vmem>>, %arg8: memref<8x2xf32, #tpu.memory_space<vmem>>) attributes {dimension_semantics = [#tpu.dimension_semantics<parallel>], iteration_bounds = array<i64: 1>, scalar_prefetch = 0 : i64, scratch_operands = 0 : i64, tpu.core_type = #tpu.core_type<tc>, window_params = [{transform_indices = @transform_0, window_bounds = array<i64: 8, 4>}, {pipeline_mode = #tpu.pipeline_mode<synchronous>, transform_indices = @transform_1, window_bounds = array<i64: 4, 128>}, {pipeline_mode = #tpu.pipeline_mode<synchronous>, transform_indices = @transform_2, window_bounds = array<i64: 1, 128>}, {pipeline_mode = #tpu.pipeline_mode<synchronous>, transform_indices = @transform_3, window_bounds = array<i64: 128, 128>}, {pipeline_mode = #tpu.pipeline_mode<synchronous>, transform_indices = @transform_4, window_bounds = array<i64: 1, 128>}, {pipeline_mode = #tpu.pipeline_mode<synchronous>, transform_indices = @transform_5, window_bounds = array<i64: 128, 2>}, {pipeline_mode = #tpu.pipeline_mode<synchronous>, transform_indices = @transform_6, window_bounds = array<i64: 1, 2>}, {transform_indices = @transform_7, window_bounds = array<i64: 8, 2>}]} {
    %c0 = arith.constant 0 : index
    %c0_0 = arith.constant 0 : index
    %0 = vector.load %arg1[%c0, %c0_0] : memref<8x4xf32, #tpu.memory_space<vmem>>, vector<8x4xf32>
    %c0_1 = arith.constant 0 : index
    %c0_2 = arith.constant 0 : index
    %1 = vector.load %arg2[%c0_1, %c0_2] : memref<4x128xf32, #tpu.memory_space<vmem>>, vector<4x128xf32>
    %cst = arith.constant dense<0.000000e+00> : vector<8x128xf32>
    %2 = tpu.matmul %0, %1, %cst {dimension_numbers = #tpu.dot_dimension_numbers<[1], [0], [0], [1], [0, 0, 1, 1], [], []>} : vector<8x4xf32>, vector<4x128xf32>, vector<8x128xf32> -> vector<8x128xf32>
    %c0_3 = arith.constant 0 : index
    %c0_4 = arith.constant 0 : index
    %3 = vector.load %arg3[%c0_3, %c0_4] : memref<1x128xf32, #tpu.memory_space<vmem>>, vector<1x128xf32>
    %4 = vector.broadcast %3 : vector<1x128xf32> to vector<8x128xf32>
    %5 = arith.addf %2, %4 : vector<8x128xf32>
    %cst_5 = arith.constant 0.000000e+00 : f32
    %6 = vector.broadcast %cst_5 : f32 to vector<8x128xf32>
    %7 = arith.cmpf ogt, %5, %6 : vector<8x128xf32>
    %cst_6 = arith.constant 0.00999999977 : f32
    %8 = vector.broadcast %cst_6 : f32 to vector<8x128xf32>
    %9 = arith.mulf %8, %5 : vector<8x128xf32>
    %10 = arith.select %7, %5, %9 : vector<8x128xi1>, vector<8x128xf32>
    %c0_7 = arith.constant 0 : index
    %c0_8 = arith.constant 0 : index
    %11 = vector.load %arg4[%c0_7, %c0_8] : memref<128x128xf32, #tpu.memory_space<vmem>>, vector<128x128xf32>
    %cst_9 = arith.constant dense<0.000000e+00> : vector<8x128xf32>
    %12 = tpu.matmul %10, %11, %cst_9 {dimension_numbers = #tpu.dot_dimension_numbers<[1], [0], [0], [1], [0, 0, 1, 1], [], []>} : vector<8x128xf32>, vector<128x128xf32>, vector<8x128xf32> -> vector<8x128xf32>
    %c0_10 = arith.constant 0 : index
    %c0_11 = arith.constant 0 : index
    %13 = vector.load %arg5[%c0_10, %c0_11] : memref<1x128xf32, #tpu.memory_space<vmem>>, vector<1x128xf32>
    %14 = vector.broadcast %13 : vector<1x128xf32> to vector<8x128xf32>
    %15 = arith.addf %12, %14 : vector<8x128xf32>
    %cst_12 = arith.constant 0.000000e+00 : f32
    %16 = vector.broadcast %cst_12 : f32 to vector<8x128xf32>
    %17 = arith.cmpf ogt, %15, %16 : vector<8x128xf32>
    %cst_13 = arith.constant 0.00999999977 : f32
    %18 = vector.broadcast %cst_13 : f32 to vector<8x128xf32>
    %19 = arith.mulf %18, %15 : vector<8x128xf32>
    %20 = arith.select %17, %15, %19 : vector<8x128xi1>, vector<8x128xf32>
    %c0_14 = arith.constant 0 : index
    %c0_15 = arith.constant 0 : index
    %21 = vector.load %arg6[%c0_14, %c0_15] : memref<128x2xf32, #tpu.memory_space<vmem>>, vector<128x2xf32>
    %cst_16 = arith.constant dense<0.000000e+00> : vector<8x2xf32>
    %22 = tpu.matmul %20, %21, %cst_16 {dimension_numbers = #tpu.dot_dimension_numbers<[1], [0], [0], [1], [0, 0, 1, 1], [], []>} : vector<8x128xf32>, vector<128x2xf32>, vector<8x2xf32> -> vector<8x2xf32>
    %c0_17 = arith.constant 0 : index
    %c0_18 = arith.constant 0 : index
    %23 = vector.load %arg7[%c0_17, %c0_18] : memref<1x2xf32, #tpu.memory_space<vmem>>, vector<1x2xf32>
    %24 = vector.broadcast %23 : vector<1x2xf32> to vector<8x2xf32>
    %25 = arith.addf %22, %24 : vector<8x2xf32>
    %c0_19 = arith.constant 0 : index
    %c0_20 = arith.constant 0 : index
    %26 = vector.load %arg8[%c0_19, %c0_20] : memref<8x2xf32, #tpu.memory_space<vmem>>, vector<8x2xf32>
    tpu.vector_store %arg8[%c0_19, %c0_20], %25 {strides = array<i32>} : memref<8x2xf32, #tpu.memory_space<vmem>>, vector<8x2xf32>,
    return
  }
  func.func @transform_0(%arg0: i32) -> (i32, i32) {
    %c0_i32 = arith.constant 0 : i32
    %c0_i32_0 = arith.constant 0 : i32
    return %arg0, %c0_i32 : i32, i32
  }
  func.func @transform_1(%arg0: i32) -> (i32, i32) {
    %c0_i32 = arith.constant 0 : i32
    %c0_i32_0 = arith.constant 0 : i32
    %c0_i32_1 = arith.constant 0 : i32
    return %c0_i32, %c0_i32_0 : i32, i32
  }
  func.func @transform_2(%arg0: i32) -> (i32, i32) {
    %c0_i32 = arith.constant 0 : i32
    %c0_i32_0 = arith.constant 0 : i32
    %c0_i32_1 = arith.constant 0 : i32
    return %c0_i32, %c0_i32_0 : i32, i32
  }
  func.func @transform_3(%arg0: i32) -> (i32, i32) {
    %c0_i32 = arith.constant 0 : i32
    %c0_i32_0 = arith.constant 0 : i32
    %c0_i32_1 = arith.constant 0 : i32
    return %c0_i32, %c0_i32_0 : i32, i32
  }
  func.func @transform_4(%arg0: i32) -> (i32, i32) {
    %c0_i32 = arith.constant 0 : i32
    %c0_i32_0 = arith.constant 0 : i32
    %c0_i32_1 = arith.constant 0 : i32
    return %c0_i32, %c0_i32_0 : i32, i32
  }
  func.func @transform_5(%arg0: i32) -> (i32, i32) {
    %c0_i32 = arith.constant 0 : i32
    %c0_i32_0 = arith.constant 0 : i32
    %c0_i32_1 = arith.constant 0 : i32
    return %c0_i32, %c0_i32_0 : i32, i32
  }
  func.func @transform_6(%arg0: i32) -> (i32, i32) {
    %c0_i32 = arith.constant 0 : i32
    %c0_i32_0 = arith.constant 0 : i32
    %c0_i32_1 = arith.constant 0 : i32
    return %c0_i32, %c0_i32_0 : i32, i32
  }
  func.func @transform_7(%arg0: i32) -> (i32, i32) {
    %c0_i32 = arith.constant 0 : i32
    %c0_i32_0 = arith.constant 0 : i32
    return %arg0, %c0_i32 : i32, i32
  }
}

</mosaic_0001>

<bundles_post_ra>
// kernel: tpu_custom_call.1
= control target key start
LH: loop header
LB: loop body
LE: loop exit
PB: predicated region body
PF: predicated region fallthrough
CT: control target
= control target key end

     0   :  { %vm36_vm0 = vcmask 1043456   ;;  %vm32_vm1 = vcmask 31744   ;;  %vm146_vm4 = vcmask 15360   ;;  %s311_s1 = inlined_call_operand.vmem [shape: f32[4,128], index: 1, kind: input, shape index: {}]   ;;  %s312_s0 = inlined_call_operand.vmem [shape: f32[8,4], index: 0, kind: input, shape index: {}]   ;;  %s313_s3 = inlined_call_operand.vmem [shape: f32[128,128], index: 3, kind: input, shape index: {}]   ;;  %s314_s2 = inlined_call_operand.vmem [shape: f32[1,128], index: 2, kind: input, shape index: {}]   ;;  %s315_s4 = inlined_call_operand.vmem [shape: f32[1,128], index: 4, kind: input, shape index: {}]   ;;  %s316_s5 = inlined_call_operand.vmem [shape: f32[128,2], index: 5, kind: input, shape index: {}]   ;;  %s317_s6 = inlined_call_operand.vmem [shape: f32[1,2], index: 6, kind: input, shape index: {}]   ;;  %s318_s7 = inlined_call_operand.vmem [shape: f32[8,2], index: 7, kind: output, shape index: {}]  }
   0x1   :  { %v27_v0 = vld [vmem:[%s311_s1] sm:$0xf]  ;;  %v78_v2 = vld [vmem:[%s313_s3 + $0x78] sm:$0xff]  ;;  %v77_v3 = vld [vmem:[%s313_s3 + $0x70] sm:$0xff] }
   0x2   :  { %v26_v1 = vld [vmem:[%s312_s0] sm:$0xff]  ;;  %152 = vmatpush.msk.msra.mxu0 %vm36_vm0, %v27_v0  ;;  %83 = vmatpush.msra.mxu1 %v78_v2  ;;  %v76_v4 = vld [vmem:[%s313_s3 + $0x68] sm:$0xff]  ;;  %v74_v6 = vld [vmem:[%s313_s3 + $0x58] sm:$0xff] }
   0x3   :  { %153 = vmatmul.msk.f32.vlgmr.msra.gmra.mxu0 %vm32_vm1, %v26_v1  ;;  %v75_v5 = vld [vmem:[%s313_s3 + $0x60] sm:$0xff]  ;;  %v73_v7 = vld [vmem:[%s313_s3 + $0x50] sm:$0xff]  ;;  %v72_v8 = vld [vmem:[%s313_s3 + $0x48] sm:$0xff] }
   0x4   :  { %84 = vmatpush.msra.mxu1 %v77_v3  ;;  %v71_v9 = vld [vmem:[%s313_s3 + $0x40] sm:$0xff]  ;;  %v70_v10 = vld [vmem:[%s313_s3 + $0x38] sm:$0xff]  ;;  %v69_v11 = vld [vmem:[%s313_s3 + $0x30] sm:$0xff] }
   0x5   :  { %v68_v12 = vld [vmem:[%s313_s3 + $0x28] sm:$0xff]  ;;  %v67_v13 = vld [vmem:[%s313_s3 + $0x20] sm:$0xff]  ;;  %v66_v14 = vld [vmem:[%s313_s3 + $0x18] sm:$0xff] }
   0x6   :  { %85 = vmatpush.msra.mxu1 %v76_v4  ;;  %v65_v15 = vld [vmem:[%s313_s3 + $0x10] sm:$0xff]  ;;  %v64_v16 = vld [vmem:[%s313_s3 + $0x8] sm:$0xff]  ;;  %v63_v17 = vld [vmem:[%s313_s3] sm:$0xff] }
   0x7   :  { %v121_v18 = vld [vmem:[%s316_s5 + $0x78] sm:$0xff]  ;;  %v120_v19 = vld [vmem:[%s316_s5 + $0x70] sm:$0xff]  ;;  %v119_v20 = vld [vmem:[%s316_s5 + $0x68] sm:$0xff] }
   0x8   :  { %86 = vmatpush.msra.mxu1 %v75_v5  ;;  %126 = vmatpush.msra.mxu2 %v121_v18  ;;  %v118_v21 = vld [vmem:[%s316_s5 + $0x60] sm:$0xff]  ;;  %v117_v22 = vld [vmem:[%s316_s5 + $0x58] sm:$0xff]  ;;  %v116_v23 = vld [vmem:[%s316_s5 + $0x50] sm:$0xff] }
   0x9   :  { %v115_v24 = vld [vmem:[%s316_s5 + $0x48] sm:$0xff]  ;;  %v114_v25 = vld [vmem:[%s316_s5 + $0x40] sm:$0xff]  ;;  %v113_v26 = vld [vmem:[%s316_s5 + $0x38] sm:$0xff] }
   0xa   :  { %87 = vmatpush.msra.mxu1 %v74_v6  ;;  %127 = vmatpush.msra.mxu2 %v120_v19  ;;  %v112_v27 = vld [vmem:[%s316_s5 + $0x30] sm:$0xff]  ;;  %v111_v28 = vld [vmem:[%s316_s5 + $0x28] sm:$0xff]  ;;  %v110_v29 = vld [vmem:[%s316_s5 + $0x20] sm:$0xff] }
   0xb   :  { %v109_v30 = vld [vmem:[%s316_s5 + $0x18] sm:$0xff]  ;;  %v154_v31 = vld [vmem:[%s314_s2] ss:$0 sm:$0xff]  ;;  %v108_v36 = vld [vmem:[%s316_s5 + $0x10] sm:$0xff] }
   0xc   :  { %88 = vmatpush.msra.mxu1 %v73_v7  ;;  %128 = vmatpush.msra.mxu2 %v119_v20  ;;  %v107_v37 = vld [vmem:[%s316_s5 + $0x8] sm:$0xff]  ;;  %v106_v38 = vld [vmem:[%s316_s5] sm:$0xff] }
   0xd   :  { %v155_v39 = vld [vmem:[%s315_s4] ss:$0 sm:$0xff] }
   0xe   :  { %89 = vmatpush.msra.mxu1 %v72_v8  ;;  %129 = vmatpush.msra.mxu2 %v118_v21  ;;  %v156_v44 = vld [vmem:[%s317_s6] ss:$0 sm:$0xff] }
  0x10   :  { %90 = vmatpush.msra.mxu1 %v71_v9  ;;  %130 = vmatpush.msra.mxu2 %v117_v22 }
  0x12   :  { %91 = vmatpush.msra.mxu1 %v70_v10  ;;  %131 = vmatpush.msra.mxu2 %v116_v23 }
  0x14   :  { %92 = vmatpush.msra.mxu1 %v69_v11  ;;  %132 = vmatpush.msra.mxu2 %v115_v24 }
  0x16   :  { %93 = vmatpush.msra.mxu1 %v68_v12  ;;  %133 = vmatpush.msra.mxu2 %v114_v25 }
  0x18   :  { %94 = vmatpush.msra.mxu1 %v67_v13  ;;  %134 = vmatpush.msra.mxu2 %v113_v26 }
  0x1a   :  { %95 = vmatpush.msra.mxu1 %v66_v14  ;;  %135 = vmatpush.msra.mxu2 %v112_v27 }
  0x1c   :  { %96 = vmatpush.msra.mxu1 %v65_v15  ;;  %136 = vmatpush.msra.mxu2 %v111_v28 }
  0x1e   :  { %97 = vmatpush.msra.mxu1 %v64_v16  ;;  %137 = vmatpush.msra.mxu2 %v110_v29 }
  0x20   :  { %98 = vmatpush.msra.mxu1 %v63_v17  ;;  %138 = vmatpush.msra.mxu2 %v109_v30 }
  0x22   :  { %139 = vmatpush.msra.mxu2 %v108_v36 }
  0x24   :  { %140 = vmatpush.msra.mxu2 %v107_v37 }
  0x26   :  { %141 = vmatpush.msra.mxu2 %v106_v38 }
  0x80   :  { %v57_v32 = vpop.f32.mrf.mxu0 }
  0x81   :  { %v58_v33 = vadd.f32 %v154_v31, %v57_v32 }
  0x83   :  { %vm60_vm2 = vcmp.gt.f32.partialorder %v58_v33, 0.0  ;;  %v61_v34 = vmul.f32 0.01, %v58_v33 }
  0x85   :  { %v62_v35 = vsel %vm60_vm2, %v58_v33, %v61_v34 }
  0x86   :  { %99 = vmatmul.f32.vlgmr.msra.gmra.mxu1 %v62_v35 }
 0x103   :  { %v100_v40 = vpop.f32.mrf.mxu1 }
 0x104   :  { %v101_v41 = vadd.f32 %v155_v39, %v100_v40 }
 0x106   :  { %vm103_vm3 = vcmp.gt.f32.partialorder %v101_v41, 0.0  ;;  %v104_v42 = vmul.f32 0.01, %v101_v41 }
 0x108   :  { %v105_v43 = vsel %vm103_vm3, %v101_v41, %v104_v42 }
 0x109   :  { %142 = vmatmul.f32.vlgmr.msra.gmra.mxu2 %v105_v43 }
 0x18c   :  { %v143_v45 = vpop.f32.mrf.mxu2 }
 0x18d   :  { %v144_v46 = vadd.f32 %v156_v44, %v143_v45 }
 0x18f   :  { %147 = vst.msk [vmem:[%s318_s7] sm:$0xff] %vm146_vm4, %v144_v46 }

</bundles_post_ra>
